<compile_context>
chip_gen: v7x
topology: tpu7x:2x2x1
jax: 0.10.0
libtpu: 0.0.40
codegen_flags: <defaults>
</compile_context>

<pallas_src>
import jax
import jax.numpy as jnp
from jax.experimental import pallas as pl
from jax.experimental.pallas import tpu as pltpu


# ----------------------------------------------------------------------------
# Kernel body: one block of Bt images, layout (Bt, C, H*W).
# ----------------------------------------------------------------------------
def _attention_block_kernel(x_ref, w0t_ref, b0_ref, w1t_ref, b1_ref,
                            convm_ref, convb_ref, o_ref):
    bt, c, hw = x_ref.shape
    x = x_ref[...].astype(jnp.float32)                        # (Bt, C, HW)

    # ---- channel attention: global avg / max pool over the lane (HW) axis ----
    avg_c = jnp.mean(x, axis=2)                               # (Bt, C)
    max_c = jnp.max(x, axis=2)                                # (Bt, C)
    pooled = jnp.concatenate([avg_c, max_c], axis=0)          # (2*Bt, C)

    # Shared MLP applied once to both pooled vectors: 2 MXU pushes, not 4.
    h = jnp.maximum(
        jnp.dot(pooled, w0t_ref[...],
                preferred_element_type=jnp.float32) + b0_ref[...], 0.0)  # (2*Bt, Cr)
    mlp = jnp.dot(h, w1t_ref[...],
                  preferred_element_type=jnp.float32) + b1_ref[...]      # (2*Bt, C)
    ch_att = jax.nn.sigmoid(mlp[:bt] + mlp[bt:])              # (Bt, C)

    # x1 = ch_att * x
    x1 = x * ch_att[:, :, None]                               # (Bt, C, HW)

    # ---- spatial attention: ChannelPool (max, mean over C) + 7x7 conv ----
    cmax = jnp.max(x1, axis=1)                                # (Bt, HW)
    cmean = jnp.mean(x1, axis=1)                              # (Bt, HW)
    pooled_sp = jnp.concatenate([cmax, cmean], axis=-1)       # (Bt, 2*HW)

    # 7x7 conv (pad=3) as ONE MXU matmul against the fused Toeplitz matrix;
    # rows [0, HW) correspond to the max channel, [HW, 2*HW) to the mean
    # channel, matching ChannelPool's (max, mean) ordering.
    convm = convm_ref[...]                                    # (2*HW, HW)
    lin = jnp.dot(pooled_sp.astype(convm.dtype), convm,
                  preferred_element_type=jnp.float32) + convb_ref[0]
    scale = jax.nn.sigmoid(lin)                               # (Bt, HW)

    # forward(): out = x1 * sp_attention, sp_attention = x1 * scale
    o_ref[...] = (x1 * x1 * scale[:, None, :]).astype(o_ref.dtype)


# ----------------------------------------------------------------------------
# Wrapper helpers.
# ----------------------------------------------------------------------------
def _conv7x7_as_matrix(conv_w, H, W, out_dtype):
    """Bake a 2-in-channel 7x7 conv (stride 1, pad 3, cross-correlation) into a
    dense matrix M of shape (2*H*W, H*W) so that
        out_flat = concat([max_flat, mean_flat], -1) @ M
    equals the conv output, with pixels flattened row-major (h*W + w).

    TODO(synk): memory scales as 2*(H*W)^2; for large spatial sizes switch to an
    in-kernel pltpu.roll shift-and-add instead of this dense lowering.
    """
    ih = jnp.arange(H)
    iw = jnp.arange(W)
    dh = ih[:, None] - ih[None, :] + 3            # (H_in, H_out): kh index
    dw = iw[:, None] - iw[None, :] + 3            # (W_in, W_out): kw index
    vh = (dh >= 0) & (dh < 7)
    vw = (dw >= 0) & (dw < 7)
    dh_c = jnp.clip(dh, 0, 6)
    dw_c = jnp.clip(dw, 0, 6)

    ci = jnp.arange(2)[:, None, None, None, None]
    m5 = conv_w[ci,
                dh_c[None, :, :, None, None],
                dw_c[None, None, None, :, :]]     # (2, H_in, H_out, W_in, W_out)
    mask = vh[None, :, :, None, None] & vw[None, None, None, :, :]
    m5 = jnp.where(mask, m5, 0.0)
    # reorder to (ci, H_in, W_in, H_out, W_out) and flatten input/output pixels,
    # then stack the two input channels on the contraction (row) axis.
    return m5.transpose(0, 1, 3, 2, 4).reshape(2 * H * W, H * W).astype(out_dtype)


def _pick_batch_tile(B, C, HW, in_itemsize, toeplitz_bytes,
                     vmem_target_bytes=32 * 1024 * 1024):
    """Batch tile sized from the pipelined VMEM footprint, keeping >=2-4 grid
    steps so megacore sharding / double-buffering stay engaged."""
    # 2x input + 2x output double buffers (input dtype) + ~4 block-sized f32
    # temporaries (x, x1, products) live inside the kernel per image.
    per_img = 4 * C * HW * in_itemsize + 4 * C * HW * 4
    budget = max(per_img, vmem_target_bytes - toeplitz_bytes)
    bt_budget = max(1, budget // per_img)

    min_steps = min(B, 4)                           # aim for >=4 (>=2 if B small)
    bt_grid = max(1, -(-B // max(1, min_steps)))    # ceil(B / min_steps)

    return int(max(1, min(B, bt_budget, bt_grid)))


@jax.jit
def attention_block(x, w0_w, w0_b, w1_w, w1_b, conv_w, conv_b):
    B, C, H, W = x.shape
    HW = H * W
    Cr = w0_w.shape[0]
    assert conv_w.shape == (2, 7, 7), "Toeplitz lowering assumes 7x7/stride1/pad3"

    # Lane-dense layout: spatial dims flattened onto the 128-wide lane axis.
    x_r = x.reshape(B, C, HW)

    # PyTorch Linear weights are (out, in); pre-transpose so the kernel does
    # plain row-major matmuls:  t @ W.T + b.
    w0t = w0_w.T.astype(jnp.float32)              # (C, Cr)
    b0 = w0_b.reshape(1, Cr).astype(jnp.float32)
    w1t = w1_w.T.astype(jnp.float32)              # (Cr, C)
    b1 = w1_b.reshape(1, C).astype(jnp.float32)

    # Toeplitz conv matrix; drop to bf16 storage (f32 accumulate) if its f32
    # footprint would crowd VMEM (protects v7x's 64 MiB).
    toeplitz_f32_bytes = 2 * HW * HW * 4
    convm_dtype = jnp.float32 if toeplitz_f32_bytes <= 4 * 1024 * 1024 else jnp.bfloat16
    conv_m = _conv7x7_as_matrix(conv_w.astype(jnp.float32), H, W, convm_dtype)
    convb = conv_b.reshape(1).astype(jnp.float32)

    toeplitz_bytes = 2 * HW * HW * jnp.dtype(convm_dtype).itemsize
    Bt = _pick_batch_tile(B, C, HW, x.dtype.itemsize, toeplitz_bytes)

    # Pad batch up to a multiple of Bt (tail sliced off afterwards) so awkward
    # batch sizes keep full-size, lane-dense blocks.
    B_pad = -(-B // Bt) * Bt
    if B_pad != B:
        x_r = jnp.pad(x_r, ((0, B_pad - B), (0, 0), (0, 0)))
    grid = (B_pad // Bt,)

    out = pl.pallas_call(
        _attention_block_kernel,
        out_shape=jax.ShapeDtypeStruct((B_pad, C, HW), x.dtype),
        grid=grid,
        in_specs=[
            pl.BlockSpec((Bt, C, HW), lambda b: (b, 0, 0)),     # x block (lane-dense)
            pl.BlockSpec((C, Cr), lambda b: (0, 0)),            # w0^T
            pl.BlockSpec((1, Cr), lambda b: (0, 0)),            # b0
            pl.BlockSpec((Cr, C), lambda b: (0, 0)),            # w1^T
            pl.BlockSpec((1, C), lambda b: (0, 0)),             # b1
            pl.BlockSpec((2 * HW, HW), lambda b: (0, 0)),       # fused conv Toeplitz
            pl.BlockSpec(memory_space=pltpu.MemorySpace.SMEM),  # conv bias scalar
        ],
        out_specs=pl.BlockSpec((Bt, C, HW), lambda b: (b, 0, 0)),
        compiler_params=pltpu.CompilerParams(
            dimension_semantics=("parallel",),                  # megacore on v7x
            vmem_limit_bytes=40 * 1024 * 1024,                  # safe on 64 MiB v7x
        ),
    )(x_r, w0t, b0, w1t, b1, conv_m, convb)

    return out[:B].reshape(B, C, H, W)


# ----------------------------------------------------------------------------
# Pure-JAX reference mirroring the PyTorch forward.
# ----------------------------------------------------------------------------
def attention_block_reference(x, w0_w, w0_b, w1_w, w1_b, conv_w, conv_b):
    avg = x.mean(axis=(2, 3))                                 # (B, C)
    mx = x.max(axis=(2, 3))                                   # (B, C)

    def mlp(t):
        h = jax.nn.relu(t @ w0_w.T + w0_b)
        return h @ w1_w.T + w1_b

    ch = jax.nn.sigmoid(mlp(mx) + mlp(avg))                   # (B, C)
    x1 = x * ch[:, :, None, None]

    cmax = x1.max(axis=1, keepdims=True)
    cmean = x1.mean(axis=1, keepdims=True)
    comp = jnp.concatenate([cmax, cmean], axis=1)             # (B, 2, H, W)
    conv = jax.lax.conv_general_dilated(
        comp, conv_w[None],                                   # (1, 2, 7, 7)
        window_strides=(1, 1), padding=((3, 3), (3, 3)),
        dimension_numbers=("NCHW", "OIHW", "NCHW")) + conv_b[0]
    scale = jax.nn.sigmoid(conv)                              # (B, 1, H, W)
    sp_attention = x1 * scale
    return x1 * sp_attention


if __name__ == "__main__":
    # Small shapes consistent with the module: feature == channels
    B, C, H, W = 2, 32, 16, 16
    ratio = 4
    Cr = C // ratio

    key = jax.random.PRNGKey(0)
    kx, k0w, k0b, k1w, k1b, kcw, kcb = jax.random.split(key, 7)

    x = jax.random.normal(kx, (B, C, H, W), jnp.float32)

    # PyTorch shapes: Linear (out, in), Conv (out=1 squeezed, in=2, kh, kw)
    w0_w = jax.random.normal(k0w, (Cr, C), jnp.float32) * 0.1
    w0_b = jax.random.normal(k0b, (Cr,), jnp.float32) * 0.1
    w1_w = jax.random.normal(k1w, (C, Cr), jnp.float32) * 0.1
    w1_b = jax.random.normal(k1b, (C,), jnp.float32) * 0.1
    conv_w = jax.random.normal(kcw, (2, 7, 7), jnp.float32) * 0.1
    conv_b = jax.random.normal(kcb, (1,), jnp.float32) * 0.1

    out = attention_block(x, w0_w, w0_b, w1_w, w1_b, conv_w, conv_b)
    out = jax.block_until_ready(out)

    ref = attention_block_reference(x, w0_w, w0_b, w1_w, w1_b, conv_w, conv_b)
    ref = jax.block_until_ready(ref)

    assert out.shape == (B, C, H, W)
    assert jnp.allclose(out, ref, rtol=1e-4, atol=1e-4), (
        f"max abs err = {jnp.max(jnp.abs(out - ref))}")

    print("KERNEL_OK")
</pallas_src>

<mosaic_0001>
module attributes {stable_mosaic.version = 11 : i64} {
  func.func @_attention_block_kernel(%arg0: i32, %arg1: memref<1x32x256xf32, #tpu.memory_space<vmem>>, %arg2: memref<32x8xf32, #tpu.memory_space<vmem>>, %arg3: memref<1x8xf32, #tpu.memory_space<vmem>>, %arg4: memref<8x32xf32, #tpu.memory_space<vmem>>, %arg5: memref<1x32xf32, #tpu.memory_space<vmem>>, %arg6: memref<512x256xf32, #tpu.memory_space<vmem>>, %arg7: memref<1xf32, #tpu.memory_space<smem>>, %arg8: memref<1x32x256xf32, #tpu.memory_space<vmem>>) attributes {dimension_semantics = [#tpu.dimension_semantics<parallel>], iteration_bounds = array<i64: 2>, scalar_prefetch = 0 : i64, scratch_operands = 0 : i64, tpu.core_type = #tpu.core_type<tc>, window_params = [{transform_indices = @transform_0, window_bounds = array<i64: 1, 32, 256>}, {pipeline_mode = #tpu.pipeline_mode<synchronous>, transform_indices = @transform_1, window_bounds = array<i64: 32, 8>}, {pipeline_mode = #tpu.pipeline_mode<synchronous>, transform_indices = @transform_2, window_bounds = array<i64: 1, 8>}, {pipeline_mode = #tpu.pipeline_mode<synchronous>, transform_indices = @transform_3, window_bounds = array<i64: 8, 32>}, {pipeline_mode = #tpu.pipeline_mode<synchronous>, transform_indices = @transform_4, window_bounds = array<i64: 1, 32>}, {pipeline_mode = #tpu.pipeline_mode<synchronous>, transform_indices = @transform_5, window_bounds = array<i64: 512, 256>}, {transform_indices = @transform_6, window_bounds = array<i64: 1>}, {transform_indices = @transform_7, window_bounds = array<i64: 1, 32, 256>}]} {
    %c0 = arith.constant 0 : index
    %c0_0 = arith.constant 0 : index
    %c0_1 = arith.constant 0 : index
    %0 = vector.load %arg1[%c0, %c0_0, %c0_1] : memref<1x32x256xf32, #tpu.memory_space<vmem>>, vector<1x32x256xf32>
    %cst = arith.constant dense<0.000000e+00> : vector<1x32xf32>
    %1 = vector.multi_reduction <add>, %0, %cst [2] : vector<1x32x256xf32> to vector<1x32xf32>
    %cst_2 = arith.constant 2.560000e+02 : f32
    %2 = vector.broadcast %cst_2 : f32 to vector<1x32xf32>
    %3 = arith.divf %1, %2 : vector<1x32xf32>
    %cst_3 = arith.constant dense<0xFF800000> : vector<1x32xf32>
    %4 = vector.multi_reduction <maximumf>, %0, %cst_3 [2] : vector<1x32x256xf32> to vector<1x32xf32>
    %5 = tpu.concatenate %3, %4 in 0 : vector<1x32xf32>, vector<1x32xf32> -> vector<2x32xf32>
    %c0_4 = arith.constant 0 : index
    %c0_5 = arith.constant 0 : index
    %6 = vector.load %arg2[%c0_4, %c0_5] : memref<32x8xf32, #tpu.memory_space<vmem>>, vector<32x8xf32>
    %cst_6 = arith.constant dense<0.000000e+00> : vector<2x8xf32>
    %7 = tpu.matmul %5, %6, %cst_6 {dimension_numbers = #tpu.dot_dimension_numbers<[1], [0], [0], [1], [0, 0, 1, 1], [], []>} : vector<2x32xf32>, vector<32x8xf32>, vector<2x8xf32> -> vector<2x8xf32>
    %c0_7 = arith.constant 0 : index
    %c0_8 = arith.constant 0 : index
    %8 = vector.load %arg3[%c0_7, %c0_8] : memref<1x8xf32, #tpu.memory_space<vmem>>, vector<1x8xf32>
    %9 = vector.broadcast %8 : vector<1x8xf32> to vector<2x8xf32>
    %10 = arith.addf %7, %9 : vector<2x8xf32>
    %cst_9 = arith.constant 0.000000e+00 : f32
    %11 = vector.broadcast %cst_9 : f32 to vector<2x8xf32>
    %12 = arith.maximumf %10, %11 : vector<2x8xf32>
    %c0_10 = arith.constant 0 : index
    %c0_11 = arith.constant 0 : index
    %13 = vector.load %arg4[%c0_10, %c0_11] : memref<8x32xf32, #tpu.memory_space<vmem>>, vector<8x32xf32>
    %cst_12 = arith.constant dense<0.000000e+00> : vector<2x32xf32>
    %14 = tpu.matmul %12, %13, %cst_12 {dimension_numbers = #tpu.dot_dimension_numbers<[1], [0], [0], [1], [0, 0, 1, 1], [], []>} : vector<2x8xf32>, vector<8x32xf32>, vector<2x32xf32> -> vector<2x32xf32>
    %c0_13 = arith.constant 0 : index
    %c0_14 = arith.constant 0 : index
    %15 = vector.load %arg5[%c0_13, %c0_14] : memref<1x32xf32, #tpu.memory_space<vmem>>, vector<1x32xf32>
    %16 = vector.broadcast %15 : vector<1x32xf32> to vector<2x32xf32>
    %17 = arith.addf %14, %16 : vector<2x32xf32>
    %18 = vector.extract_strided_slice %17 {offsets = [0, 0], sizes = [1, 32], strides = [1, 1]} : vector<2x32xf32> to vector<1x32xf32>
    %19 = vector.extract_strided_slice %17 {offsets = [1, 0], sizes = [1, 32], strides = [1, 1]} : vector<2x32xf32> to vector<1x32xf32>
    %20 = arith.addf %18, %19 : vector<1x32xf32>
    %21 = arith.negf %20 : vector<1x32xf32>
    %22 = math.exp %21 : vector<1x32xf32>
    %cst_15 = arith.constant 1.000000e+00 : f32
    %23 = vector.broadcast %cst_15 : f32 to vector<1x32xf32>
    %24 = arith.addf %23, %22 : vector<1x32xf32>
    %25 = arith.divf %23, %24 : vector<1x32xf32>
    %26 = vector.shape_cast %25 : vector<1x32xf32> to vector<1x32x1xf32>
    %27 = vector.broadcast %26 : vector<1x32x1xf32> to vector<1x32x256xf32>
    %28 = arith.mulf %0, %27 : vector<1x32x256xf32>
    %cst_16 = arith.constant dense<0xFF800000> : vector<1x256xf32>
    %29 = vector.multi_reduction <maximumf>, %28, %cst_16 [1] : vector<1x32x256xf32> to vector<1x256xf32>
    %cst_17 = arith.constant dense<0.000000e+00> : vector<1x256xf32>
    %30 = vector.multi_reduction <add>, %28, %cst_17 [1] : vector<1x32x256xf32> to vector<1x256xf32>
    %cst_18 = arith.constant 3.200000e+01 : f32
    %31 = vector.broadcast %cst_18 : f32 to vector<1x256xf32>
    %32 = arith.divf %30, %31 : vector<1x256xf32>
    %33 = tpu.concatenate %29, %32 in 1 : vector<1x256xf32>, vector<1x256xf32> -> vector<1x512xf32>
    %c0_19 = arith.constant 0 : index
    %c0_20 = arith.constant 0 : index
    %34 = vector.load %arg6[%c0_19, %c0_20] : memref<512x256xf32, #tpu.memory_space<vmem>>, vector<512x256xf32>
    %cst_21 = arith.constant dense<0.000000e+00> : vector<1x256xf32>
    %35 = tpu.matmul %33, %34, %cst_21 {dimension_numbers = #tpu.dot_dimension_numbers<[1], [0], [0], [1], [0, 0, 1, 1], [], []>} : vector<1x512xf32>, vector<512x256xf32>, vector<1x256xf32> -> vector<1x256xf32>
    %c0_22 = arith.constant 0 : index
    %36 = memref.load %arg7[%c0_22] : memref<1xf32, #tpu.memory_space<smem>>
    %37 = vector.broadcast %36 : f32 to vector<1x256xf32>
    %38 = arith.addf %35, %37 : vector<1x256xf32>
    %39 = arith.negf %38 : vector<1x256xf32>
    %40 = math.exp %39 : vector<1x256xf32>
    %cst_23 = arith.constant 1.000000e+00 : f32
    %41 = vector.broadcast %cst_23 : f32 to vector<1x256xf32>
    %42 = arith.addf %41, %40 : vector<1x256xf32>
    %43 = arith.divf %41, %42 : vector<1x256xf32>
    %44 = arith.mulf %28, %28 : vector<1x32x256xf32>
    %45 = vector.shape_cast %43 : vector<1x256xf32> to vector<1x1x256xf32>
    %46 = vector.broadcast %45 : vector<1x1x256xf32> to vector<1x32x256xf32>
    %47 = arith.mulf %44, %46 : vector<1x32x256xf32>
    %c0_24 = arith.constant 0 : index
    %c0_25 = arith.constant 0 : index
    %c0_26 = arith.constant 0 : index
    %48 = vector.load %arg8[%c0_24, %c0_25, %c0_26] : memref<1x32x256xf32, #tpu.memory_space<vmem>>, vector<1x32x256xf32>
    tpu.vector_store %arg8[%c0_24, %c0_25, %c0_26], %47 {strides = array<i32>} : memref<1x32x256xf32, #tpu.memory_space<vmem>>, vector<1x32x256xf32>,
    return
  }
  func.func @transform_0(%arg0: i32) -> (i32, i32, i32) {
    %c0_i32 = arith.constant 0 : i32
    %c0_i32_0 = arith.constant 0 : i32
    %c0_i32_1 = arith.constant 0 : i32
    return %arg0, %c0_i32, %c0_i32_0 : i32, i32, i32
  }
  func.func @transform_1(%arg0: i32) -> (i32, i32) {
    %c0_i32 = arith.constant 0 : i32
    %c0_i32_0 = arith.constant 0 : i32
    %c0_i32_1 = arith.constant 0 : i32
    return %c0_i32, %c0_i32_0 : i32, i32
  }
  func.func @transform_2(%arg0: i32) -> (i32, i32) {
    %c0_i32 = arith.constant 0 : i32
    %c0_i32_0 = arith.constant 0 : i32
    %c0_i32_1 = arith.constant 0 : i32
    return %c0_i32, %c0_i32_0 : i32, i32
  }
  func.func @transform_3(%arg0: i32) -> (i32, i32) {
    %c0_i32 = arith.constant 0 : i32
    %c0_i32_0 = arith.constant 0 : i32
    %c0_i32_1 = arith.constant 0 : i32
    return %c0_i32, %c0_i32_0 : i32, i32
  }
  func.func @transform_4(%arg0: i32) -> (i32, i32) {
    %c0_i32 = arith.constant 0 : i32
    %c0_i32_0 = arith.constant 0 : i32
    %c0_i32_1 = arith.constant 0 : i32
    return %c0_i32, %c0_i32_0 : i32, i32
  }
  func.func @transform_5(%arg0: i32) -> (i32, i32) {
    %c0_i32 = arith.constant 0 : i32
    %c0_i32_0 = arith.constant 0 : i32
    %c0_i32_1 = arith.constant 0 : i32
    return %c0_i32, %c0_i32_0 : i32, i32
  }
  func.func @transform_6(%arg0: i32) -> i32 {
    %c0_i32 = arith.constant 0 : i32
    %c0_i32_0 = arith.constant 0 : i32
    return %c0_i32 : i32
  }
  func.func @transform_7(%arg0: i32) -> (i32, i32, i32) {
    %c0_i32 = arith.constant 0 : i32
    %c0_i32_0 = arith.constant 0 : i32
    %c0_i32_1 = arith.constant 0 : i32
    return %arg0, %c0_i32, %c0_i32_0 : i32, i32, i32
  }
}

</mosaic_0001>

<bundles_post_ra>
// kernel: attention_block.1
= control target key start
LH: loop header
LB: loop body
LE: loop exit
PB: predicated region body
PF: predicated region fallthrough
CT: control target
= control target key end

     0   :  { %s1248_s26 = smov 0   ;;  %s1779_s0 = inlined_call_operand.vmem [shape: f32[2,32,256], index: 0, kind: input, shape index: {}]   ;;  %s1780_s1 = inlined_call_operand.vmem [shape: f32[32,8], index: 1, kind: input, shape index: {}]   ;;  %s1781_s2 = inlined_call_operand.vmem [shape: f32[1,8], index: 2, kind: input, shape index: {}]   ;;  %s1782_s3 = inlined_call_operand.vmem [shape: f32[8,32], index: 3, kind: input, shape index: {}]   ;;  %s1783_s4 = inlined_call_operand.vmem [shape: f32[1,32], index: 4, kind: input, shape index: {}]   ;;  %s1784_s5 = inlined_call_operand.vmem [shape: f32[512,256], index: 5, kind: input, shape index: {}]   ;;  %s1785_s6 = inlined_call_operand.<no memory space> [shape: f32[1], index: 6, kind: input, shape index: {}]   ;;  %s1786_s7 = inlined_call_operand.vmem [shape: f32[2,32,256], index: 7, kind: output, shape index: {}]  }
   0x1   :  { %12 = sst [smem:[#allocation2]] %s1785_s6 }
   0x2 LB: > { %s990_s27 = sadd.s32 4294967295, %s1200_s26   ;;  %p994_p0 = scmp.ge.s32.totalorder %s1200_s26, 1  ;;  %s1200_s26 = sphi %s1248_s26, %s18_s26  }
   0x3   : > { %p238_p1 = scmp.lt.s32.totalorder %s1200_s26, 3 }
   0x5   : > { %p239_p2 = pnand %p994_p0, %p238_p1 }
   0x6   : > { %p270_p3 = scmp.lt.s32.totalorder (!%p239_p2), %s990_s27, 1  ;;  %v375_v16 = vld [vmem:[%s1780_s1] sm:$0xff] (!%p239_p2)  ;;  %v376_v17 = vld [vmem:[%s1780_s1 + $0x8] sm:$0xff] (!%p239_p2)  ;;  %v1202_v19 = vmov (!%p239_p2), 0.0|0.0   ;;  %v377_v20 = vld [vmem:[%s1780_s1 + $0x10] sm:$0xff] (!%p239_p2)  ;;  %vm1203_vm0 = vmmov (!%p239_p2), 0   ;;  %v321_v24 = vlaneseq (!%p239_p2) }
   0x7   : > { %242 = sbr.rel (%p239_p2) target bundleno = 1034 (0x40a), region = 48  ;;  %v1034_v18 = vpack.c.bf16 (!%p239_p2), %v376_v17, %v375_v16  ;;  %1033 = vmatprep.subr.bf16.mxu0 (!%p239_p2), %v1202_v19  ;;  %v378_v21 = vld [vmem:[%s1780_s1 + $0x18] sm:$0xff] (!%p239_p2)  ;;  %v1204_v23 = vmov (!%p239_p2), 0.0   ;;  %vm332_vm1 = vcmask (!%p239_p2), 130112   ;;  %vm339_vm2 = vcmask (!%p239_p2), 195712   ;;  %v461_v61 = vld [vmem:[%s1782_s3] sm:$0xff] (!%p239_p2) }
   0x8   : > { %v1037_v22 = vpack.c.bf16 (!%p239_p2), %v378_v21, %v377_v20  ;;  %1025 = vmatprep.mubr.msk.f32.mxu0 (!%p239_p2), %vm1203_vm0, %v1204_v23  ;;  %1028 = vmatprep.subr.mxu1 (!%p239_p2), %v1204_v23  ;;  %v322_v25 = vand.u32 (!%p239_p2), 127, %v321_v24  ;;  %v1308_v28 = vshrl.u32 (!%p239_p2), %v321_v24, 7  ;;  %vm346_vm3 = vcmask (!%p239_p2), 261312   ;;  %v999_v62 = vld [vmem:[%s1781_s2] ss:$0 sm:$0xff] (!%p239_p2)  ;;  %v621_v17 = vld [vmem:[%s1784_s5 + $0x10] sm:$0xff] (!%p239_p2) }
   0x9   : > { %1035 = vmatpush3.bf16.msra.mxu0 (!%p239_p2), %v1034_v18  ;;  %1030 = vmatprep.mubr.msk.f32.mxu1 (!%p239_p2), %vm1203_vm0, %v1204_v23  ;;  %vm373_vm4 = vcmask (!%p239_p2), 1040384   ;;  %vm386_vm5 = vcmask (!%p239_p2), 261120   ;;  %vm469_vm6 = vcmask (!%p239_p2), 64512   ;;  %v619_v16 = vld [vmem:[%s1784_s5] sm:$0xff] (!%p239_p2)  ;;  %v685_v21 = vld [vmem:[%s1784_s5 + $0x210] sm:$0xff] (!%p239_p2)  ;;  %v626_v24 = vld [vmem:[%s1784_s5 + $0x38] sm:$0xff] (!%p239_p2) }
   0xa   : > { %1036 = vmatprep.subr.bf16.mxu0 (!%p239_p2), %v1202_v19  ;;  %v327_v27 = vadd.s32 (!%p239_p2), 4294967288, %v322_v25  ;;  %v334_v30 = vadd.s32 (!%p239_p2), 4294967280, %v322_v25  ;;  %v325_v33 = vsub.s32 (!%p239_p2), %v322_v25, %v1308_v28  ;;  %v341_v35 = vadd.s32 (!%p239_p2), 4294967272, %v322_v25  ;;  %1029 = vmatpush3.msra.mxu1 (!%p239_p2), %v461_v61  ;;  %v683_v20 = vld [vmem:[%s1784_s5 + $0x200] sm:$0xff] (!%p239_p2)  ;;  %v688_v25 = vld [vmem:[%s1784_s5 + $0x228] sm:$0xff] (!%p239_p2)  ;;  %v702_v61 = vld [vmem:[%s1784_s5 + $0x298] sm:$0xff] (!%p239_p2) }
   0xb   : > { %v1041_v19 = vpack.c.bf16 (!%p239_p2), %v621_v17, %v619_v16  ;;  %v1105_v23 = vpack.c.bf16 (!%p239_p2), %v685_v21, %v683_v20  ;;  %v704_v16 = vld [vmem:[%s1784_s5 + $0x2a8] sm:$0xff] (!%p239_p2)  ;;  %v706_v17 = vld [vmem:[%s1784_s5 + $0x2b8] sm:$0xff] (!%p239_p2)  ;;  %v639_v21 = vld [vmem:[%s1784_s5 + $0xa0] sm:$0xff] (!%p239_p2)  ;;  %s747_s28 = sld [smem:[#allocation2]] (!%p239_p2) }
   0xc   : > { %v330_v32 = vsub.s32 (!%p239_p2), %v327_v27, %v1308_v28  ;;  %v337_v38 = vsub.s32 (!%p239_p2), %v334_v30, %v1308_v28  ;;  %v344_v43 = vsub.s32 (!%p239_p2), %v341_v35, %v1308_v28  ;;  %v623_v30 = vld [vmem:[%s1784_s5 + $0x20] sm:$0xff] (!%p239_p2)  ;;  %v628_v35 = vld [vmem:[%s1784_s5 + $0x48] sm:$0xff] (!%p239_p2) }
   0xd   : > { %1038 = vmatpush3.bf16.msra.mxu0 (!%p239_p2), %v1037_v22  ;;  %v624_v22 = vld [vmem:[%s1784_s5 + $0x28] sm:$0xff] (!%p239_p2) }
   0xe   : > { %s1788_s27 = smov (!%p270_p3, %s990_s27), 1  ;;  %v1043_v27 = vpack.c.bf16 %v626_v24, %v624_v22  ;;  %v641_v22 = vld [vmem:[%s1784_s5 + $0xb0] sm:$0xff]  ;;  %v1123_v24 = vpack.c.bf16 %v706_v17, %v704_v16 }
   0xf   : > { %s1008_s6 = sshll.u32 %s1788_s27, 6 }
  0x10   : > { %s274_s30 = scalar_lea.vmem %s1779_s0, %s1008_s6  ;;  %s279_s8 = scalar_lea.vmem %s1786_s7, %s1008_s6 }
  0x11   : > { %v1264_v0 = vld [vmem:[%s274_s30 + $0x20] sm:$0xff]  ;;  %v1266_v1 = vld [vmem:[%s274_s30 + $0x28] sm:$0xff]  ;;  %v1274_v5 = vld [vmem:[%s274_s30 + $0x30] sm:$0xff] }
  0x12   : > { %v1268_v2 = vld [vmem:[%s274_s30] sm:$0xff]  ;;  %v294_v3 = vadd.f32 %v1266_v1, %v1264_v0  ;;  %v1272_v4 = vld [vmem:[%s274_s30 + $0x8] sm:$0xff]  ;;  %v1276_v6 = vld [vmem:[%s274_s30 + $0x38] sm:$0xff]  ;;  %v311_v15 = vmax.f32 %v1264_v0, %v1266_v1 }
  0x13   : > { %v288_v7 = vadd.f32 %v1272_v4, %v1268_v2  ;;  %v1280_v8 = vld [vmem:[%s274_s30 + $0x10] sm:$0xff]  ;;  %v1282_v9 = vld [vmem:[%s274_s30 + $0x18] sm:$0xff]  ;;  %v297_v10 = vadd.f32 %v1276_v6, %v1274_v5  ;;  %v305_v13 = vmax.f32 %v1268_v2, %v1272_v4  ;;  %v314_v14 = vmax.f32 %v1274_v5, %v1276_v6 }
  0x14   : > { %295 = vadd.xlane.f32.xlu1 %v294_v3  ;;  %v291_v11 = vadd.f32 %v1282_v9, %v1280_v8  ;;  %v308_v12 = vmax.f32 %v1280_v8, %v1282_v9 }
  0x15   : > { %289 = vadd.xlane.f32.xlu0 %v288_v7 }
  0x18   : > { %298 = vadd.xlane.f32.xlu1 %v297_v10 }
  0x19   : > { %292 = vadd.xlane.f32.xlu0 %v291_v11  ;;  %v620_v11 = vld [vmem:[%s1784_s5 + $0x8] sm:$0xff] }
  0x1c   : > { %309 = vmax.xlane.f32.xlu1 %v308_v12  ;;  %v622_v12 = vld [vmem:[%s1784_s5 + $0x18] sm:$0xff] }
  0x1d   : > { %306 = vmax.xlane.f32.xlu0 %v305_v13  ;;  %v684_v13 = vld [vmem:[%s1784_s5 + $0x208] sm:$0xff] }
  0x20   : > { %315 = vmax.xlane.f32.xlu1 %v314_v14  ;;  %v1039_v14 = vpack.c.bf16 %v622_v12, %v620_v11  ;;  %v699_v11 = vld [vmem:[%s1784_s5 + $0x280] sm:$0xff] }
  0x21   : > { %312 = vmax.xlane.f32.xlu0 %v311_v15  ;;  %v686_v15 = vld [vmem:[%s1784_s5 + $0x218] sm:$0xff] }
  0x22   : > { %v1103_v18 = vpack.c.bf16 %v686_v15, %v684_v13  ;;  %1040 = vmatprep.subr.bf16.mxu0 %v1039_v14  ;;  %v701_v13 = vld [vmem:[%s1784_s5 + $0x290] sm:$0xff]  ;;  %v640_v14 = vld [vmem:[%s1784_s5 + $0xa8] sm:$0xff]  ;;  %v642_v15 = vld [vmem:[%s1784_s5 + $0xb8] sm:$0xff] }
  0x23   : > { %v1059_v20 = vpack.c.bf16 %v642_v15, %v640_v14  ;;  %v1001_v15 = vld [vmem:[%s1783_s4] ss:$0 sm:$0xff] }
  0x24   : > { %1104 = vmatprep.subr.bf16.mxu1 %v1103_v18 }
  0xa1   : > { %v296_v26 = vpop.xlane.xlu1 %295 }
  0xa2   : > { %v290_v29 = vpop.xlane.xlu0 %289  ;;  %v303_v39 = vmul.f32 0.00390625, %v296_v26  ;;  %v690_v26 = vld [vmem:[%s1784_s5 + $0x238] sm:$0xff] }
  0xa3   : > { %v301_v34 = vmul.f32 0.00390625, %v290_v29  ;;  %v1107_v29 = vpack.c.bf16 %v690_v26, %v688_v25  ;;  %v705_v25 = vld [vmem:[%s1784_s5 + $0x2b0] sm:$0xff]  ;;  %v644_v26 = vld [vmem:[%s1784_s5 + $0xc8] sm:$0xff] }
  0xa4   : > { %v338_v49 = vrot.slane %v303_v39, %v337_v38  ;;  %v692_v39 = vld [vmem:[%s1784_s5 + $0x248] sm:$0xff] }
  0xa5   : > { %v299_v31 = vpop.xlane.xlu1 %298  ;;  %v326_v42 = vrot.slane %v301_v34, %v325_v33  ;;  %v689_v34 = vld [vmem:[%s1784_s5 + $0x230] sm:$0xff] }
  0xa6   : > { %v293_v36 = vpop.xlane.xlu0 %292  ;;  %v304_v44 = vmul.f32 0.00390625, %v299_v31  ;;  %v625_v31 = vld [vmem:[%s1784_s5 + $0x30] sm:$0xff] }
  0xa7   : > { %v302_v37 = vmul.f32 0.00390625, %v293_v36  ;;  %v630_v36 = vld [vmem:[%s1784_s5 + $0x58] sm:$0xff] }
  0xa8   : > { %v345_v51 = vrot.slane %v304_v44, %v344_v43  ;;  %v691_v44 = vld [vmem:[%s1784_s5 + $0x240] sm:$0xff] }
  0xa9   : > { %v331_v40 = vrot.slane %v302_v37, %v330_v32  ;;  %v310_v41 = vpop.xlane.xlu1 %309 }
  0xaa   : > { %v307_v45 = vpop.xlane.xlu0 %306  ;;  %v360_v47 = vrot.slane %v310_v41, %v330_v32  ;;  %v687_v32 = vld [vmem:[%s1784_s5 + $0x220] sm:$0xff] }
  0xab   : > { %v333_v46 = vsel %vm332_vm1, %v331_v40, %v326_v42  ;;  %v356_v48 = vrot.slane %v307_v45, %v325_v33  ;;  %v1045_v33 = vpack.c.bf16 %v625_v31, %v623_v30  ;;  %v1109_v37 = vpack.c.bf16 %v689_v34, %v687_v32  ;;  %v694_v40 = vld [vmem:[%s1784_s5 + $0x258] sm:$0xff]  ;;  %v627_v41 = vld [vmem:[%s1784_s5 + $0x40] sm:$0xff]  ;;  %v693_v45 = vld [vmem:[%s1784_s5 + $0x250] sm:$0xff] }
  0xac   : > { %v340_v55 = vsel %vm339_vm2, %v338_v49, %v333_v46  ;;  %v1111_v42 = vpack.c.bf16 %v694_v40, %v692_v39  ;;  %v696_v49 = vld [vmem:[%s1784_s5 + $0x268] sm:$0xff]  ;;  %v710_v30 = vld [vmem:[%s1784_s5 + $0x2d8] sm:$0xff]  ;;  %v1061_v31 = vpack.c.bf16 %v641_v22, %v639_v21  ;;  %v643_v34 = vld [vmem:[%s1784_s5 + $0xc0] sm:$0xff] }
  0xad   : > { %v316_v50 = vpop.xlane.xlu1 %315  ;;  %v361_v56 = vsel %vm332_vm1, %v360_v47, %v356_v48  ;;  %v347_v59 = vsel %vm346_vm3, %v345_v51, %v340_v55  ;;  %v632_v47 = vld [vmem:[%s1784_s5 + $0x68] sm:$0xff]  ;;  %v634_v48 = vld [vmem:[%s1784_s5 + $0x78] sm:$0xff] }
  0xae   : > { %v313_v52 = vpop.xlane.xlu0 %312  ;;  %v370_v53 = vrot.slane %v316_v50, %v344_v43  ;;  %v629_v43 = vld [vmem:[%s1784_s5 + $0x50] sm:$0xff]  ;;  %v1113_v50 = vpack.c.bf16 %v693_v45, %v691_v44  ;;  %v1051_v51 = vpack.c.bf16 %v634_v48, %v632_v47  ;;  %v648_v39 = vld [vmem:[%s1784_s5 + $0xe8] sm:$0xff]  ;;  %v650_v40 = vld [vmem:[%s1784_s5 + $0xf8] sm:$0xff] }
  0xaf   : > { %v365_v54 = vrot.slane %v313_v52, %v337_v38  ;;  %v1047_v38 = vpack.c.bf16 %v630_v36, %v628_v35  ;;  %v1049_v46 = vpack.c.bf16 %v629_v43, %v627_v41  ;;  %v698_v52 = vld [vmem:[%s1784_s5 + $0x278] sm:$0xff]  ;;  %v645_v35 = vld [vmem:[%s1784_s5 + $0xd0] sm:$0xff]  ;;  %v707_v36 = vld [vmem:[%s1784_s5 + $0x2c0] sm:$0xff]  ;;  %v1067_v45 = vpack.c.bf16 %v650_v40, %v648_v39 }
  0xb0   : > { %v1115_v55 = vpack.c.bf16 %v698_v52, %v696_v49  ;;  %v712_v41 = vld [vmem:[%s1784_s5 + $0x2e8] sm:$0xff]  ;;  %v1065_v43 = vpack.c.bf16 %v645_v35, %v643_v34  ;;  %v649_v47 = vld [vmem:[%s1784_s5 + $0xf0] sm:$0xff]  ;;  %v711_v48 = vld [vmem:[%s1784_s5 + $0x2e0] sm:$0xff] }
  0xb1   : > { %v366_v57 = vsel %vm339_vm2, %v365_v54, %v361_v56  ;;  %v633_v54 = vld [vmem:[%s1784_s5 + $0x70] sm:$0xff]  ;;  %v695_v56 = vld [vmem:[%s1784_s5 + $0x260] sm:$0xff]  ;;  %v654_v52 = vld [vmem:[%s1784_s5 + $0x118] sm:$0xff] }
  0xb2   : > { %v371_v58 = vsel %vm346_vm3, %v370_v53, %v366_v57  ;;  %v631_v53 = vld [vmem:[%s1784_s5 + $0x60] sm:$0xff]  ;;  %v697_v57 = vld [vmem:[%s1784_s5 + $0x270] sm:$0xff]  ;;  %v726_v35 = vld [vmem:[%s1784_s5 + $0x358] sm:$0xff] }
  0xb3   : > { %v374_v60 = vsel %vm373_vm4, %v347_v59, %v371_v58  ;;  %v636_v58 = vld [vmem:[%s1784_s5 + $0x88] sm:$0xff]  ;;  %v638_v59 = vld [vmem:[%s1784_s5 + $0x98] sm:$0xff]  ;;  %v723_v40 = vld [vmem:[%s1784_s5 + $0x340] sm:$0xff] }
  0xb4   : > { %1026 = vmatmul.mubr.msk.f32.vlgmr.msra.gmra.mrb[0].mxu0 %vm386_vm5, %v374_v60  ;;  %v700_v60 = vld [vmem:[%s1784_s5 + $0x288] sm:$0xff] }
  0xb5   : > { %1042 = vmatpush1.bf16.msra.mxu0 %v1041_v19  ;;  %v1119_v12 = vpack.c.bf16 %v702_v61, %v700_v60  ;;  %v1121_v19 = vpack.c.bf16 %v701_v13, %v699_v11  ;;  %v715_v60 = vld [vmem:[%s1784_s5 + $0x300] sm:$0xff] }
  0xb6   : > { %1044 = vmatprep.subr.bf16.mxu0 %v1043_v27  ;;  %v646_v27 = vld [vmem:[%s1784_s5 + $0xd8] sm:$0xff] }
  0xb9   : > { %1046 = vmatpush1.bf16.msra.mxu0 %v1045_v33  ;;  %v1063_v33 = vpack.c.bf16 %v646_v27, %v644_v26  ;;  %v719_v26 = vld [vmem:[%s1784_s5 + $0x320] sm:$0xff] }
  0xba   : > { %1048 = vmatprep.subr.bf16.mxu0 %v1047_v38  ;;  %v709_v38 = vld [vmem:[%s1784_s5 + $0x2d0] sm:$0xff] }
  0xbb   : > { %v1129_v44 = vpack.c.bf16 %v709_v38, %v707_v36  ;;  %v659_v36 = vld [vmem:[%s1784_s5 + $0x140] sm:$0xff] }
  0xbd   : > { %1050 = vmatpush1.bf16.msra.mxu0 %v1049_v46  ;;  %v647_v46 = vld [vmem:[%s1784_s5 + $0xe0] sm:$0xff] }
  0xbe   : > { %1052 = vmatprep.subr.bf16.mxu0 %v1051_v51  ;;  %v652_v51 = vld [vmem:[%s1784_s5 + $0x108] sm:$0xff] }
 0x187   : > { %v456_v63 = vpop.f32.mrb[0].mxu0 }
 0x188   : > { %v457_v3 = vadd.f32 %v999_v62, %v456_v63  ;;  %v1027_v7 = vpop.f32.mrb[1].mxu0  ;;  %v1053_v62 = vpack.c.bf16 %v633_v54, %v631_v53  ;;  %v1117_v63 = vpack.c.bf16 %v697_v57, %v695_v56  ;;  %v716_v53 = vld [vmem:[%s1784_s5 + $0x308] sm:$0xff]  ;;  %v718_v54 = vld [vmem:[%s1784_s5 + $0x318] sm:$0xff]  ;;  %v1071_v57 = vpack.c.bf16 %v654_v52, %v652_v51 }
 0x189   : > { %v635_v7 = vld [vmem:[%s1784_s5 + $0x80] sm:$0xff]  ;;  %v1135_v61 = vpack.c.bf16 %v718_v54, %v716_v53  ;;  %v729_v54 = vld [vmem:[%s1784_s5 + $0x370] sm:$0xff] }
 0x18a   : > { %v460_v10 = vmax.f32 %v457_v3, 0.0  ;;  %v1055_v3 = vpack.c.bf16 %v638_v59, %v636_v58  ;;  %1054 = vmatpush1.bf16.msra.mxu0 %v1053_v62  ;;  %v651_v58 = vld [vmem:[%s1784_s5 + $0x100] sm:$0xff]  ;;  %v653_v59 = vld [vmem:[%s1784_s5 + $0x110] sm:$0xff] }
 0x18b   : > { %v717_v62 = vld [vmem:[%s1784_s5 + $0x310] sm:$0xff]  ;;  %v1073_v11 = vpack.c.bf16 %v653_v59, %v651_v58  ;;  %v727_v53 = vld [vmem:[%s1784_s5 + $0x360] sm:$0xff] }
 0x18c   : > { %1031 = vmatmul.mubr.msk.f32.vlgmr.msra.gmra.mrb[0].mxu1 %vm469_vm6, %v460_v10  ;;  %v637_v10 = vld [vmem:[%s1784_s5 + $0x90] sm:$0xff]  ;;  %1056 = vmatprep.subr.bf16.mxu0 %v1055_v3  ;;  %v658_v3 = vld [vmem:[%s1784_s5 + $0x138] sm:$0xff] }
 0x18d   : > { %1106 = vmatpush1.bf16.msra.mxu1 %v1105_v23  ;;  %v1057_v18 = vpack.c.bf16 %v637_v10, %v635_v7  ;;  %v703_v23 = vld [vmem:[%s1784_s5 + $0x2a0] sm:$0xff]  ;;  %v720_v7 = vld [vmem:[%s1784_s5 + $0x328] sm:$0xff]  ;;  %v722_v10 = vld [vmem:[%s1784_s5 + $0x338] sm:$0xff] }
 0x18e   : > { %1108 = vmatprep.subr.bf16.mxu1 %v1107_v29  ;;  %v708_v29 = vld [vmem:[%s1784_s5 + $0x2c8] sm:$0xff]  ;;  %v1125_v32 = vpack.c.bf16 %v705_v25, %v703_v23  ;;  %v1139_v14 = vpack.c.bf16 %v722_v10, %v720_v7  ;;  %v657_v25 = vld [vmem:[%s1784_s5 + $0x130] sm:$0xff]  ;;  %v731_v10 = vld [vmem:[%s1784_s5 + $0x380] sm:$0xff] }
 0x18f   : > { %1058 = vmatpush1.bf16.msra.mxu0 %v1057_v18 }
 0x190   : > { %1060 = vmatprep.subr.bf16.mxu0 %v1059_v20 }
 0x191   : > { %1110 = vmatpush1.bf16.msra.mxu1 %v1109_v37  ;;  %v1127_v37 = vpack.c.bf16 %v710_v30, %v708_v29  ;;  %v721_v29 = vld [vmem:[%s1784_s5 + $0x330] sm:$0xff] }
 0x192   : > { %1112 = vmatprep.subr.bf16.mxu1 %v1111_v42  ;;  %v714_v42 = vld [vmem:[%s1784_s5 + $0x2f8] sm:$0xff]  ;;  %v1141_v30 = vpack.c.bf16 %v721_v29, %v719_v26 }
 0x193   : > { %1062 = vmatpush1.bf16.msra.mxu0 %v1061_v31  ;;  %v1131_v49 = vpack.c.bf16 %v714_v42, %v712_v41  ;;  %v660_v31 = vld [vmem:[%s1784_s5 + $0x148] sm:$0xff]  ;;  %v725_v41 = vld [vmem:[%s1784_s5 + $0x350] sm:$0xff]  ;;  %v678_v26 = vld [vmem:[%s1784_s5 + $0x1d8] sm:$0xff] }
 0x194   : > { %1064 = vmatprep.subr.bf16.mxu0 %v1063_v33  ;;  %v724_v33 = vld [vmem:[%s1784_s5 + $0x348] sm:$0xff]  ;;  %v1145_v42 = vpack.c.bf16 %v725_v41, %v723_v40  ;;  %v746_v41 = vld [vmem:[%s1784_s5 + $0x3f8] sm:$0xff] }
 0x195   : > { %1114 = vmatpush1.bf16.msra.mxu1 %v1113_v50  ;;  %v713_v50 = vld [vmem:[%s1784_s5 + $0x2f0] sm:$0xff]  ;;  %v1143_v38 = vpack.c.bf16 %v726_v35, %v724_v33  ;;  %v739_v35 = vld [vmem:[%s1784_s5 + $0x3c0] sm:$0xff]  ;;  %v744_v40 = vld [vmem:[%s1784_s5 + $0x3e8] sm:$0xff] }
 0x196   : > { %1116 = vmatprep.subr.bf16.mxu1 %v1115_v55  ;;  %v1069_v55 = vpack.c.bf16 %v649_v47, %v647_v46  ;;  %v1133_v56 = vpack.c.bf16 %v713_v50, %v711_v48  ;;  %v730_v47 = vld [vmem:[%s1784_s5 + $0x378] sm:$0xff]  ;;  %v663_v48 = vld [vmem:[%s1784_s5 + $0x160] sm:$0xff]  ;;  %v1608_v50 = vsub.s32 0, %v1308_v28 }
 0x197   : > { %1066 = vmatpush1.bf16.msra.mxu0 %v1065_v43  ;;  %v664_v43 = vld [vmem:[%s1784_s5 + $0x168] sm:$0xff]  ;;  %v670_v28 = vld [vmem:[%s1784_s5 + $0x198] sm:$0xff] }
 0x198   : > { %1068 = vmatprep.subr.bf16.mxu0 %v1067_v45  ;;  %v728_v45 = vld [vmem:[%s1784_s5 + $0x368] sm:$0xff] }
 0x199   : > { %1118 = vmatpush1.bf16.msra.mxu1 %v1117_v63  ;;  %v656_v63 = vld [vmem:[%s1784_s5 + $0x128] sm:$0xff]  ;;  %v1147_v51 = vpack.c.bf16 %v730_v47, %v728_v45  ;;  %v681_v45 = vld [vmem:[%s1784_s5 + $0x1f0] sm:$0xff] }
 0x19a   : > { %1120 = vmatprep.subr.bf16.mxu1 %v1119_v12  ;;  %v1137_v12 = vpack.c.bf16 %v717_v62, %v715_v60  ;;  %v1075_v13 = vpack.c.bf16 %v658_v3, %v656_v63  ;;  %v734_v60 = vld [vmem:[%s1784_s5 + $0x398] sm:$0xff]  ;;  %v669_v62 = vld [vmem:[%s1784_s5 + $0x190] sm:$0xff] }
 0x19b   : > { %1070 = vmatpush1.bf16.msra.mxu0 %v1069_v55  ;;  %v1149_v55 = vpack.c.bf16 %v729_v54, %v727_v53 }
 0x19c   : > { %1072 = vmatprep.subr.bf16.mxu0 %v1071_v57  ;;  %v732_v57 = vld [vmem:[%s1784_s5 + $0x388] sm:$0xff] }
 0x19d   : > { %1122 = vmatpush1.bf16.msra.mxu1 %v1121_v19  ;;  %v1151_v3 = vpack.c.bf16 %v734_v60, %v732_v57 }
 0x19e   : > { %1124 = vmatprep.subr.bf16.mxu1 %v1123_v24  ;;  %v655_v24 = vld [vmem:[%s1784_s5 + $0x120] sm:$0xff] }
 0x19f   : > { %1074 = vmatpush1.bf16.msra.mxu0 %v1073_v11  ;;  %v1077_v27 = vpack.c.bf16 %v657_v25, %v655_v24  ;;  %v733_v11 = vld [vmem:[%s1784_s5 + $0x390] sm:$0xff]  ;;  %v676_v25 = vld [vmem:[%s1784_s5 + $0x1c8] sm:$0xff] }
 0x1a0   : > { %1076 = vmatprep.subr.bf16.mxu0 %v1075_v13  ;;  %v672_v13 = vld [vmem:[%s1784_s5 + $0x1a8] sm:$0xff]  ;;  %v1095_v29 = vpack.c.bf16 %v678_v26, %v676_v25 }
 0x1a1   : > { %1126 = vmatpush1.bf16.msra.mxu1 %v1125_v32  ;;  %v662_v32 = vld [vmem:[%s1784_s5 + $0x158] sm:$0xff] }
 0x1a2   : > { %1128 = vmatprep.subr.bf16.mxu1 %v1127_v37  ;;  %v1079_v34 = vpack.c.bf16 %v662_v32, %v660_v31  ;;  %v661_v37 = vld [vmem:[%s1784_s5 + $0x150] sm:$0xff]  ;;  %v675_v31 = vld [vmem:[%s1784_s5 + $0x1c0] sm:$0xff] }
 0x1a3   : > { %1078 = vmatpush1.bf16.msra.mxu0 %v1077_v27  ;;  %v1081_v39 = vpack.c.bf16 %v661_v37, %v659_v36  ;;  %v740_v27 = vld [vmem:[%s1784_s5 + $0x3c8] sm:$0xff]  ;;  %v677_v32 = vld [vmem:[%s1784_s5 + $0x1d0] sm:$0xff] }
 0x1a4   : > { %1080 = vmatprep.subr.bf16.mxu0 %v1079_v34  ;;  %v1097_v34 = vpack.c.bf16 %v677_v32, %v675_v31  ;;  %v741_v36 = vld [vmem:[%s1784_s5 + $0x3d0] sm:$0xff]  ;;  %v680_v37 = vld [vmem:[%s1784_s5 + $0x1e8] sm:$0xff] }
 0x1a5   : > { %1130 = vmatpush1.bf16.msra.mxu1 %v1129_v44  ;;  %v666_v44 = vld [vmem:[%s1784_s5 + $0x178] sm:$0xff] }
 0x1a6   : > { %1132 = vmatprep.subr.bf16.mxu1 %v1131_v49  ;;  %v1083_v46 = vpack.c.bf16 %v666_v44, %v664_v43  ;;  %v665_v49 = vld [vmem:[%s1784_s5 + $0x170] sm:$0xff]  ;;  %v1163_v43 = vpack.c.bf16 %v746_v41, %v744_v40  ;;  %v679_v44 = vld [vmem:[%s1784_s5 + $0x1e0] sm:$0xff] }
 0x1a7   : > { %1082 = vmatpush1.bf16.msra.mxu0 %v1081_v39  ;;  %v1085_v52 = vpack.c.bf16 %v665_v49, %v663_v48  ;;  %v682_v39 = vld [vmem:[%s1784_s5 + $0x1f8] sm:$0xff]  ;;  %v1101_v47 = vpack.c.bf16 %v681_v45, %v679_v44  ;;  %v745_v48 = vld [vmem:[%s1784_s5 + $0x3f0] sm:$0xff] }
 0x1a8   : > { %1084 = vmatprep.subr.bf16.mxu0 %v1083_v46  ;;  %v743_v46 = vld [vmem:[%s1784_s5 + $0x3e0] sm:$0xff] }
 0x1a9   : > { %1134 = vmatpush1.bf16.msra.mxu1 %v1133_v56  ;;  %v668_v56 = vld [vmem:[%s1784_s5 + $0x188] sm:$0xff]  ;;  %v1165_v49 = vpack.c.bf16 %v745_v48, %v743_v46 }
 0x1aa   : > { %1136 = vmatprep.subr.bf16.mxu1 %v1135_v61  ;;  %v1087_v59 = vpack.c.bf16 %v670_v28, %v668_v56  ;;  %v667_v61 = vld [vmem:[%s1784_s5 + $0x180] sm:$0xff] }
 0x1ab   : > { %1086 = vmatpush1.bf16.msra.mxu0 %v1085_v52  ;;  %v1089_v7 = vpack.c.bf16 %v669_v62, %v667_v61 }
 0x1ac   : > { %1088 = vmatprep.subr.bf16.mxu0 %v1087_v59 }
 0x1ad   : > { %1138 = vmatpush1.bf16.msra.mxu1 %v1137_v12  ;;  %v1153_v12 = vpack.c.bf16 %v733_v11, %v731_v10 }
 0x1ae   : > { %1140 = vmatprep.subr.bf16.mxu1 %v1139_v14  ;;  %v674_v14 = vld [vmem:[%s1784_s5 + $0x1b8] sm:$0xff] }
 0x1af   : > { %1090 = vmatpush1.bf16.msra.mxu0 %v1089_v7 }
 0x1b1   : > { %1142 = vmatpush1.bf16.msra.mxu1 %v1141_v30  ;;  %v742_v30 = vld [vmem:[%s1784_s5 + $0x3d8] sm:$0xff] }
 0x1b2   : > { %1144 = vmatprep.subr.bf16.mxu1 %v1143_v38  ;;  %v1159_v33 = vpack.c.bf16 %v742_v30, %v740_v27  ;;  %v1161_v38 = vpack.c.bf16 %v741_v36, %v739_v35 }
 0x1b5   : > { %1146 = vmatpush1.bf16.msra.mxu1 %v1145_v42  ;;  %v1099_v42 = vpack.c.bf16 %v682_v39, %v680_v37  ;;  %v748_v37 = vstv %s747_s28 }
 0x1b6   : > { %1148 = vmatprep.subr.bf16.mxu1 %v1147_v51 }
 0x1b9   : > { %1150 = vmatpush1.bf16.msra.mxu1 %v1149_v55 }
 0x1ba   : > { %1152 = vmatprep.subr.bf16.mxu1 %v1151_v3 }
 0x1bd   : > { %1154 = vmatpush1.bf16.msra.mxu1 %v1153_v12 }
 0x25f   : > { %v539_v16 = vpop.f32.mrb[0].mxu1 }
 0x260   : > { %v540_v17 = vadd.f32 %v1001_v15, %v539_v16  ;;  %v1032_v18 = vpop.f32.mrb[1].mxu1  ;;  %v736_v15 = vld [vmem:[%s1784_s5 + $0x3a8] sm:$0xff]  ;;  %v1091_v16 = vpack.c.bf16 %v674_v14, %v672_v13 }
 0x261   : > { %v671_v18 = vld [vmem:[%s1784_s5 + $0x1a0] sm:$0xff] }
 0x262   : > { %v544_v19 = vrot.slane %v540_v17, 1  ;;  %1092 = vmatprep.subr.bf16.mxu0 %v1091_v16 }
 0x264   : > { %v546_v20 = vadd.f32 %v544_v19, %v540_v17  ;;  %v738_v17 = vld [vmem:[%s1784_s5 + $0x3b8] sm:$0xff]  ;;  %v673_v19 = vld [vmem:[%s1784_s5 + $0x1b0] sm:$0xff] }
 0x266   : > { %v1003_v21 = vmul.f32 -1.442695, %v546_v20  ;;  %v1155_v20 = vpack.c.bf16 %v738_v17, %v736_v15 }
 0x268   : > { %1182 = vpow2.f32 %v1003_v21  ;;  %v1093_v21 = vpack.c.bf16 %v673_v19, %v671_v18  ;;  %1156 = vmatprep.subr.bf16.mxu1 %v1155_v20 }
 0x26a   : > { %1094 = vmatpush1.bf16.msra.mxu0 %v1093_v21 }
 0x26b   : > { %1096 = vmatprep.subr.bf16.mxu0 %v1095_v29 }
 0x26e   : > { %1098 = vmatpush1.bf16.msra.mxu0 %v1097_v34 }
 0x26f   : > { %1100 = vmatprep.subr.bf16.mxu0 %v1099_v42 }
 0x272   : > { %v1183_v22 = vpop.eup %1182  ;;  %1102 = vmatpush1.bf16.msra.mxu0 %v1101_v47 }
 0x273   : > { %v550_v23 = vadd.f32 1.0, %v1183_v22  ;;  %v735_v22 = vld [vmem:[%s1784_s5 + $0x3a0] sm:$0xff] }
 0x275   : > { %1184 = vrcp.f32 %v550_v23  ;;  %v737_v23 = vld [vmem:[%s1784_s5 + $0x3b0] sm:$0xff] }
 0x276   : > { %v1157_v24 = vpack.c.bf16 %v737_v23, %v735_v22 }
 0x278   : > { %1158 = vmatpush1.bf16.msra.mxu1 %v1157_v24 }
 0x279   : > { %1160 = vmatprep.subr.bf16.mxu1 %v1159_v33 }
 0x27c   : > { %1162 = vmatpush1.bf16.msra.mxu1 %v1161_v38 }
 0x27d   : > { %1164 = vmatprep.subr.bf16.mxu1 %v1163_v43 }
 0x27f   : > { %v1185_v58 = vpop.eup %1184 }
 0x280   : > { %v556_v63 = vrot.slane %v1185_v58, %v1608_v50  ;;  %1166 = vmatpush1.bf16.msra.mxu1 %v1165_v49 }
 0x282   : > { %562 = vbcast.lane.b32.xlu1 %v556_v63, 264  ;;  %558 = vbcast.lane.b32.xlu0 %v556_v63, 256 }
 0x286   : > { %566 = vbcast.lane.b32.xlu1 %v556_v63, 272 }
 0x28a   : > { %570 = vbcast.lane.b32.xlu1 %v556_v63, 280 }
 0x2f4   : > { %v563_v51 = vpop.permute.xlu1 %562  ;;  %v559_v52 = vpop.permute.xlu0 %558 }
 0x2f5   : > { %v1714_v53 = vmul.f32 %v563_v51, %v1280_v8  ;;  %v1717_v54 = vmul.f32 %v563_v51, %v1282_v9  ;;  %v1720_v55 = vmul.f32 %v559_v52, %v1268_v2  ;;  %v1723_v56 = vmul.f32 %v559_v52, %v1272_v4 }
 0x2f7   : > { %v598_v8 = vadd.f32 %v1714_v53, %v1720_v55  ;;  %v607_v9 = vadd.f32 %v1717_v54, %v1723_v56 }
 0x2f8   : > { %v567_v28 = vpop.permute.xlu1 %566 }
 0x2f9   : > { %v1726_v57 = vmul.f32 %v567_v28, %v1264_v0  ;;  %v1729_v58 = vmul.f32 %v567_v28, %v1266_v1 }
 0x2fb   : > { %v599_v2 = vadd.f32 %v598_v8, %v1726_v57  ;;  %v608_v60 = vadd.f32 %v607_v9, %v1729_v58  ;;  %v580_v1 = vmax.f32 %v1720_v55, %v1726_v57  ;;  %v589_v61 = vmax.f32 %v1723_v56, %v1729_v58 }
 0x2fc   : > { %v571_v59 = vpop.permute.xlu1 %570  ;;  %v905_v8 = vmul.f32 %v1714_v53, %v1714_v53  ;;  %v906_v9 = vmul.f32 %v1717_v54, %v1717_v54 }
 0x2fd   : > { %v1738_v4 = vmul.f32 %v571_v59, %v1274_v5  ;;  %v1741_v0 = vmul.f32 %v571_v59, %v1276_v6 }
 0x2ff   : > { %v581_v62 = vmax.f32 %v1714_v53, %v1738_v4  ;;  %v590_v63 = vmax.f32 %v1717_v54, %v1741_v0  ;;  %v600_v3 = vadd.f32 %v599_v2, %v1738_v4  ;;  %v609_v5 = vadd.f32 %v608_v60, %v1741_v0 }
 0x300   : > { %v903_v2 = vmul.f32 %v1720_v55, %v1720_v55  ;;  %v907_v60 = vmul.f32 %v1726_v57, %v1726_v57  ;;  %v904_v53 = vmul.f32 %v1723_v56, %v1723_v56  ;;  %v908_v54 = vmul.f32 %v1729_v58, %v1729_v58 }
 0x301   : > { %v582_v7 = vmax.f32 %v580_v1, %v581_v62  ;;  %v591_v10 = vmax.f32 %v589_v61, %v590_v63  ;;  %v601_v6 = vrot.slane %v600_v3, 4  ;;  %v610_v11 = vrot.slane %v609_v5, 4 }
 0x302   : > { %v909_v1 = vmul.f32 %v1738_v4, %v1738_v4  ;;  %v910_v55 = vmul.f32 %v1741_v0, %v1741_v0 }
 0x303   : > { %v583_v12 = vrot.slane %v582_v7, 4  ;;  %v592_v13 = vrot.slane %v591_v10, 4  ;;  %v602_v14 = vadd.f32 %v601_v6, %v600_v3  ;;  %v611_v15 = vadd.f32 %v610_v11, %v609_v5 }
 0x305   : > { %v584_v16 = vmax.f32 %v582_v7, %v583_v12  ;;  %v603_v17 = vrot.slane %v602_v14, 2  ;;  %v593_v18 = vmax.f32 %v591_v10, %v592_v13  ;;  %v612_v19 = vrot.slane %v611_v15, 2 }
 0x307   : > { %v585_v20 = vrot.slane %v584_v16, 2  ;;  %v604_v21 = vadd.f32 %v603_v17, %v602_v14  ;;  %v594_v22 = vrot.slane %v593_v18, 2  ;;  %v613_v23 = vadd.f32 %v612_v19, %v611_v15 }
 0x309   : > { %v595_v24 = vmax.f32 %v593_v18, %v594_v22  ;;  %v614_v25 = vrot.slane %v613_v23, 1  ;;  %v586_v26 = vmax.f32 %v584_v16, %v585_v20  ;;  %v605_v27 = vrot.slane %v604_v21, 1 }
 0x30b   : > { %v596_v29 = vrot.slane %v595_v24, 1  ;;  %v615_v30 = vadd.f32 %v614_v25, %v613_v23  ;;  %v587_v31 = vrot.slane %v586_v26, 1  ;;  %v606_v32 = vadd.f32 %v605_v27, %v604_v21 }
 0x30d   : > { %v597_v33 = vmax.f32 %v595_v24, %v596_v29  ;;  %v618_v34 = vmul.f32 0.03125, %v615_v30  ;;  %v588_v35 = vmax.f32 %v586_v26, %v587_v31  ;;  %v617_v36 = vmul.f32 0.03125, %v606_v32 }
 0x30f   : > { %813 = vmatprep.mubr.f32.mxu0 %v597_v33  ;;  %884 = vmatprep.mubr.f32.mxu1 %v618_v34 }
 0x310   : > { %814 = vmatmul.mubr.f32.vlgmr.msra.gmra.mrb[2].mxu0 %v588_v35  ;;  %885 = vmatmul.mubr.f32.vlgmr.msra.gmra.mrb[2].mxu1 %v617_v36 }
 0x3e3   : > { %v815_v38 = vpop.f32.mrb[2].mxu0  ;;  %v886_v39 = vpop.f32.mrb[2].mxu1 }
 0x3e4   : > { %v816_v40 = vadd.f32 %v815_v38, %v748_v37  ;;  %v817_v41 = vpop.f32.mrb[3].mxu0  ;;  %v888_v42 = vpop.f32.mrb[3].mxu1 }
 0x3e5   : > { %v818_v43 = vadd.f32 %v817_v41, %v748_v37 }
 0x3e6   : > { %v887_v44 = vadd.f32 %v886_v39, %v816_v40 }
 0x3e7   : > { %v889_v45 = vadd.f32 %v888_v42, %v818_v43 }
 0x3e8   : > { %v1004_v46 = vmul.f32 -1.442695, %v887_v44 }
 0x3e9   : > { %v1005_v47 = vmul.f32 -1.442695, %v889_v45 }
 0x3ea   : > { %1186 = vpow2.f32 %v1004_v46 }
 0x3eb   : > { %1188 = vpow2.f32 %v1005_v47 }
 0x3f4   : > { %v1187_v48 = vpop.eup %1186 }
 0x3f5   : > { %v1189_v49 = vpop.eup %1188  ;;  %v897_v51 = vadd.f32 1.0, %v1187_v48 }
 0x3f6   : > { %v898_v52 = vadd.f32 1.0, %v1189_v49 }
 0x3f7   : > { %1190 = vrcp.f32 %v897_v51 }
 0x3f8   : > { %1192 = vrcp.f32 %v898_v52 }
 0x401   : > { %v1191_v28 = vpop.eup %1190 }
 0x402   : > { %v1193_v59 = vpop.eup %1192  ;;  %v914_v61 = vrot.slane %v1191_v28, %v1608_v50 }
 0x403   : > { %v918_v57 = vrot.slane %v1193_v59, %v1608_v50 }
 0x404   : > { %v919_v62 = vmul.f32 %v914_v61, %v903_v2  ;;  %v921_v4 = vmul.f32 %v914_v61, %v905_v8  ;;  %v923_v63 = vmul.f32 %v914_v61, %v907_v60  ;;  %v925_v3 = vmul.f32 %v914_v61, %v909_v1 }
 0x405   : > { %v920_v5 = vmul.f32 %v918_v57, %v904_v53  ;;  %v922_v7 = vmul.f32 %v918_v57, %v906_v9  ;;  %v924_v10 = vmul.f32 %v918_v57, %v908_v54  ;;  %v926_v6 = vmul.f32 %v918_v57, %v910_v55 }
 0x406   : > { %927 = vst [vmem:[%s279_s8] sm:$0xff] %v919_v62  ;;  %929 = vst [vmem:[%s279_s8 + $0x10] sm:$0xff] %v921_v4 }
 0x407   : > { %931 = vst [vmem:[%s279_s8 + $0x20] sm:$0xff] %v923_v63  ;;  %933 = vst [vmem:[%s279_s8 + $0x30] sm:$0xff] %v925_v3 }
 0x408   : > { %928 = vst [vmem:[%s279_s8 + $0x8] sm:$0xff] %v920_v5  ;;  %930 = vst [vmem:[%s279_s8 + $0x18] sm:$0xff] %v922_v7 }
 0x409   : > { %932 = vst [vmem:[%s279_s8 + $0x28] sm:$0xff] %v924_v10  ;;  %934 = vst [vmem:[%s279_s8 + $0x38] sm:$0xff] %v926_v6 }
 0x40a PF: > { %s18_s26 = sadd.s32 1, %s1200_s26  }
 0x40b   : > { %p15_p4 = scmp.ge.s32.totalorder %s18_s26, 4  }
 0x40d   :  { %17 = sbr.rel (!%p15_p4) target bundleno = 2 (0x2), region = 78 }

</bundles_post_ra>
